<compile_context>
chip_gen: v7x
topology: tpu7x:2x2x1
jax: 0.10.0
libtpu: 0.0.40
codegen_flags: <defaults>
</compile_context>

<pallas_src>
import math

import jax
import jax.numpy as jnp
import numpy as np
from jax.experimental import pallas as pl
from jax.experimental.pallas import tpu as pltpu


# ----------------------------- Pallas kernel ------------------------------ #
def _set2set_kernel(x_ref, bidx_ref, w_hq_ref, w_r_ref, b_ref, out_ref,
                    h_sc, c_sc, r_sc, m_sc, l_sc, acc_sc):
    step = pl.program_id(0)
    tile = pl.program_id(1)
    last_step = pl.num_programs(0) - 1
    last_tile = pl.num_programs(1) - 1

    B, C2 = out_ref.shape
    C = C2 // 2
    TN = x_ref.shape[0]
    neg = jnp.float32(-1e30)

    # ---- one-time state init --------------------------------------------- #
    @pl.when(jnp.logical_and(step == 0, tile == 0))
    def _():
        h_sc[...] = jnp.zeros_like(h_sc)
        c_sc[...] = jnp.zeros_like(c_sc)
        r_sc[...] = jnp.zeros_like(r_sc)

    # ---- LSTM cell once per processing step (at the first node tile) ----- #
    @pl.when(tile == 0)
    def _():
        # gates = [h, r] @ W_ih^T + h @ W_hh^T + b
        #       == h @ (W_ih[:, :C]^T + W_hh^T) + r @ W_ih[:, C:]^T + b
        gates = (jnp.dot(h_sc[...], w_hq_ref[...],
                         preferred_element_type=jnp.float32)
                 + jnp.dot(r_sc[...], w_r_ref[...],
                           preferred_element_type=jnp.float32)
                 + b_ref[...])                                     # (B, 4C)
        i_g = jax.nn.sigmoid(gates[:, 0 * C:1 * C])
        f_g = jax.nn.sigmoid(gates[:, 1 * C:2 * C])
        g_g = jnp.tanh(gates[:, 2 * C:3 * C])
        o_g = jax.nn.sigmoid(gates[:, 3 * C:4 * C])
        c_new = f_g * c_sc[...] + i_g * g_g
        c_sc[...] = c_new
        h_sc[...] = o_g * jnp.tanh(c_new)                          # q == h
        # reset online-softmax state for this processing step
        m_sc[...] = jnp.full_like(m_sc, neg)
        l_sc[...] = jnp.zeros_like(l_sc)
        acc_sc[...] = jnp.zeros_like(acc_sc)

    # ---- online segment softmax over this node tile ----------------------- #
    q = h_sc[...]                                                  # (B, C)
    x_t = x_ref[...]                                               # (TN, C)
    xd = x_t.dtype
    idx = bidx_ref[...]                                            # (1, TN)
    mask = jax.lax.broadcasted_iota(jnp.int32, (B, TN), 0) == idx  # (B, TN)

    # scores[b, n] = q_b . x_n   (MXU, f32 accumulation regardless of xd)
    scores = jax.lax.dot_general(q.astype(xd), x_t,
                                 (((1,), (1,)), ((), ())),
                                 preferred_element_type=jnp.float32)  # (B, TN)

    tile_max = jnp.max(jnp.where(mask, scores, neg), axis=1, keepdims=True)
    m_new = jnp.maximum(m_sc[...], tile_max)                       # (B, 1)
    alpha = jnp.exp(m_sc[...] - m_new)                             # rescale factor
    # mask before exp -> masked entries give exp(-1e30) == 0, no inf generated
    p = jnp.exp(jnp.where(mask, scores - m_new, neg))              # (B, TN)

    l_sc[...] = alpha * l_sc[...] + jnp.sum(p, axis=1, keepdims=True)
    acc_sc[...] = alpha * acc_sc[...] + jnp.dot(
        p.astype(xd), x_t, preferred_element_type=jnp.float32)     # (B, C)
    m_sc[...] = m_new

    # ---- finalize r for this processing step ------------------------------ #
    @pl.when(tile == last_tile)
    def _():
        r_sc[...] = acc_sc[...] / (l_sc[...] + 1e-16)

    # ---- write q_star = [q, r] exactly once, at the very end -------------- #
    @pl.when(jnp.logical_and(tile == last_tile, step == last_step))
    def _():
        out_ref[:, 0:C] = h_sc[...]
        out_ref[:, C:2 * C] = r_sc[...]


# ------------------------ VMEM budget / tiling logic ----------------------- #
def _estimate_vmem_bytes(TN, B, C, n_x_buffers, x_bytes):
    """Conservative per-kernel VMEM footprint estimate (lane/sublane padded)."""
    lane_c = ((max(C, 1) + 127) // 128) * 128          # last dim pads to 128 lanes
    b_pad = ((max(B, 1) + 7) // 8) * 8                 # sublane pad
    per_tile = (n_x_buffers * TN * lane_c * x_bytes    # x buffers
                + n_x_buffers * 8 * TN * 4             # (1, TN) int32 bidx buffers
                + 8 * b_pad * TN * 4)                  # (B, TN) f32 temporaries
    fixed = 2 << 20                                    # weights, bias, scratch, slack
    return per_tile + fixed


def _vmem_capacity_bytes():
    try:
        return int(pltpu.get_tpu_info().vmem_capacity_bytes)
    except Exception:                                  # non-TPU / old runtime fallback
        return 64 << 20                                # v7x-conservative


# ------------------------------ wrapper ----------------------------------- #
def set2set_forward(x, batch_index, w_ih, w_hh, b_ih, b_hh,
                    batch_size, processing_steps, *, node_tile=1024,
                    stream_dtype=jnp.float32):
    N, C = x.shape
    B = int(batch_size)
    x_bytes = jnp.dtype(stream_dtype).itemsize

    # ---- weight prep (host side, once) ---- #
    wih_t = jnp.asarray(w_ih, jnp.float32).T            # (2C, 4C)
    whh_t = jnp.asarray(w_hh, jnp.float32).T            # (C, 4C)
    w_hq_t = wih_t[:C, :] + whh_t                       # fold W_hh (q_star[:, :C] == h)
    w_r_t = wih_t[C:, :]                                # (C, 4C)
    bias = (jnp.asarray(b_ih, jnp.float32)
            + jnp.asarray(b_hh, jnp.float32)).reshape(1, 4 * C)

    # ---- choose tiling: x resident in VMEM across steps if it fits -------- #
    cap = _vmem_capacity_bytes()                         # 64 MiB v7x, 128 MiB v5e/v6e
    budget = int(cap * 0.75)                             # leave headroom
    N_pad_min = ((max(N, 1) + 127) // 128) * 128         # smallest 128-aligned pad

    resident = _estimate_vmem_bytes(N_pad_min, B, C, 2, x_bytes) <= budget
    if resident:
        # Single node tile: every index_map returns block (0, 0), so x/bidx are
        # DMA'd HBM->VMEM exactly once and reused for all processing steps.
        TN = N_pad_min
        num_tiles = 1
        n_x_buffers = 2
        x_pipeline_mode = None
    else:
        TN = max(128, int(node_tile))
        TN -= TN % 128
        num_tiles = int(pl.cdiv(N, TN))
        n_x_buffers = 3                                  # deeper pipelining on x
        x_pipeline_mode = pl.Buffered(3)

    N_pad = num_tiles * TN

    footprint = _estimate_vmem_bytes(TN, B, C, n_x_buffers, x_bytes)
    vmem_limit = int(min(int(cap * 0.9), max(footprint + (8 << 20), 16 << 20)))

    # ---- pad node axis; pad nodes get segment id == B (matches nothing) --- #
    x32 = jnp.asarray(x, stream_dtype)
    bidx = jnp.asarray(batch_index, jnp.int32)
    if N_pad != N:
        x32 = jnp.concatenate(
            [x32, jnp.zeros((N_pad - N, C), stream_dtype)], axis=0)
        bidx = jnp.concatenate(
            [bidx, jnp.full((N_pad - N,), B, jnp.int32)], axis=0)
    bidx = bidx.reshape(1, N_pad)

    x_spec_kwargs = {}
    if x_pipeline_mode is not None:
        x_spec_kwargs["pipeline_mode"] = x_pipeline_mode

    grid = (int(processing_steps), int(num_tiles))
    grid_spec = pltpu.PrefetchScalarGridSpec(
        num_scalar_prefetch=0,
        grid=grid,
        in_specs=[
            pl.BlockSpec((TN, C), lambda s, t: (t, 0), **x_spec_kwargs),  # x tile
            pl.BlockSpec((1, TN), lambda s, t: (0, t)),       # batch index tile
            pl.BlockSpec((C, 4 * C), lambda s, t: (0, 0)),    # folded W (h path)
            pl.BlockSpec((C, 4 * C), lambda s, t: (0, 0)),    # W (r path)
            pl.BlockSpec((1, 4 * C), lambda s, t: (0, 0)),    # bias
        ],
        out_specs=pl.BlockSpec((B, 2 * C), lambda s, t: (0, 0)),
        scratch_shapes=[
            pltpu.VMEM((B, C), jnp.float32),   # h (== q)
            pltpu.VMEM((B, C), jnp.float32),   # c
            pltpu.VMEM((B, C), jnp.float32),   # r from previous step
            pltpu.VMEM((B, 1), jnp.float32),   # running segment max
            pltpu.VMEM((B, 1), jnp.float32),   # running segment sum
            pltpu.VMEM((B, C), jnp.float32),   # running weighted sum
        ],
    )

    return pl.pallas_call(
        _set2set_kernel,
        out_shape=jax.ShapeDtypeStruct((B, 2 * C), jnp.float32),
        grid_spec=grid_spec,
        compiler_params=pltpu.CompilerParams(
            dimension_semantics=("arbitrary", "arbitrary"),
            vmem_limit_bytes=vmem_limit,
        ),
    )(x32, bidx, w_hq_t, w_r_t, bias)


# --------------------------- pure-JAX reference ---------------------------- #
def set2set_reference(x, batch_index, w_ih, w_hh, b_ih, b_hh,
                      batch_size, processing_steps):
    C = x.shape[1]
    h = jnp.zeros((batch_size, C), jnp.float32)
    c = jnp.zeros((batch_size, C), jnp.float32)
    q_star = jnp.zeros((batch_size, 2 * C), jnp.float32)
    for _ in range(processing_steps):
        gates = q_star @ w_ih.T + h @ w_hh.T + b_ih + b_hh
        i_g, f_g, g_g, o_g = jnp.split(gates, 4, axis=-1)
        i_g, f_g, o_g = map(jax.nn.sigmoid, (i_g, f_g, o_g))
        g_g = jnp.tanh(g_g)
        c = f_g * c + i_g * g_g
        h = o_g * jnp.tanh(c)
        q = h
        e = jnp.sum(x * q[batch_index], axis=-1, keepdims=True)
        m = jax.ops.segment_max(e, batch_index, num_segments=batch_size)
        ex = jnp.exp(e - m[batch_index])
        s = jax.ops.segment_sum(ex, batch_index, num_segments=batch_size)
        a = ex / (s[batch_index] + 1e-16)
        r = jax.ops.segment_sum(a * x, batch_index, num_segments=batch_size)
        q_star = jnp.concatenate([q, r], axis=-1)
    return q_star


# --------------------------------- main ------------------------------------ #
if __name__ == "__main__":
    IN_CHANNEL = 32                      # C (LSTM hidden size)
    OUT_CHANNEL = 2 * IN_CHANNEL
    PROCESSING_STEPS = 3
    SEG_LENGTHS = [50, 70, 30, 50]       # 4 graphs, 200 nodes
    N_NODES = sum(SEG_LENGTHS)

    key = jax.random.PRNGKey(0)
    k1, k2, k3, k4, k5 = jax.random.split(key, 5)
    bound = 1.0 / math.sqrt(IN_CHANNEL)  # PyTorch LSTM default init range
    w_ih = jax.random.uniform(k1, (4 * IN_CHANNEL, OUT_CHANNEL),
                              minval=-bound, maxval=bound, dtype=jnp.float32)
    w_hh = jax.random.uniform(k2, (4 * IN_CHANNEL, IN_CHANNEL),
                              minval=-bound, maxval=bound, dtype=jnp.float32)
    b_ih = jax.random.uniform(k3, (4 * IN_CHANNEL,),
                              minval=-bound, maxval=bound, dtype=jnp.float32)
    b_hh = jax.random.uniform(k4, (4 * IN_CHANNEL,),
                              minval=-bound, maxval=bound, dtype=jnp.float32)

    x = jax.random.normal(k5, (N_NODES, IN_CHANNEL), dtype=jnp.float32)
    batch_index = jnp.asarray(
        np.repeat(np.arange(len(SEG_LENGTHS)), SEG_LENGTHS), jnp.int32)
    batch_size = int(batch_index.max()) + 1    # matches torch .max().item() + 1

    out = set2set_forward(x, batch_index, w_ih, w_hh, b_ih, b_hh,
                          batch_size, PROCESSING_STEPS)
    out = jax.block_until_ready(out)

    ref = set2set_reference(x, batch_index, w_ih, w_hh, b_ih, b_hh,
                            batch_size, PROCESSING_STEPS)
    np.testing.assert_allclose(np.asarray(out), np.asarray(ref),
                               rtol=2e-4, atol=2e-4)
    print("KERNEL_OK")
</pallas_src>

<mosaic_0001>
module attributes {stable_mosaic.version = 11 : i64} {
  func.func @_set2set_kernel(%arg0: i32, %arg1: i32, %arg2: memref<256x32xf32, #tpu.memory_space<vmem>>, %arg3: memref<1x256xi32, #tpu.memory_space<vmem>>, %arg4: memref<32x128xf32, #tpu.memory_space<vmem>>, %arg5: memref<32x128xf32, #tpu.memory_space<vmem>>, %arg6: memref<1x128xf32, #tpu.memory_space<vmem>>, %arg7: memref<4x64xf32, #tpu.memory_space<vmem>>, %arg8: memref<4x32xf32, #tpu.memory_space<vmem>>, %arg9: memref<4x32xf32, #tpu.memory_space<vmem>>, %arg10: memref<4x32xf32, #tpu.memory_space<vmem>>, %arg11: memref<4x1xf32, #tpu.memory_space<vmem>>, %arg12: memref<4x1xf32, #tpu.memory_space<vmem>>, %arg13: memref<4x32xf32, #tpu.memory_space<vmem>>) attributes {dimension_semantics = [#tpu.dimension_semantics<arbitrary>, #tpu.dimension_semantics<arbitrary>], iteration_bounds = array<i64: 3, 1>, scalar_prefetch = 0 : i64, scratch_operands = 6 : i64, tpu.core_type = #tpu.core_type<tc>, window_params = [{transform_indices = @transform_0, window_bounds = array<i64: 256, 32>}, {transform_indices = @transform_1, window_bounds = array<i64: 1, 256>}, {pipeline_mode = #tpu.pipeline_mode<synchronous>, transform_indices = @transform_2, window_bounds = array<i64: 32, 128>}, {pipeline_mode = #tpu.pipeline_mode<synchronous>, transform_indices = @transform_3, window_bounds = array<i64: 32, 128>}, {pipeline_mode = #tpu.pipeline_mode<synchronous>, transform_indices = @transform_4, window_bounds = array<i64: 1, 128>}, {pipeline_mode = #tpu.pipeline_mode<synchronous>, transform_indices = @transform_5, window_bounds = array<i64: 4, 64>}]} {
    %c0_i32 = arith.constant 0 : i32
    %0 = arith.cmpi eq, %arg0, %c0_i32 : i32
    %c0_i32_0 = arith.constant 0 : i32
    %1 = arith.cmpi eq, %arg1, %c0_i32_0 : i32
    %2 = arith.andi %0, %1 : i1
    %3 = arith.extui %2 : i1 to i32
    %c0_i32_1 = arith.constant 0 : i32
    %4 = arith.cmpi ne, %3, %c0_i32_1 : i32
    scf.if %4 {
      %cst_33 = arith.constant 0.000000e+00 : f32
      %50 = vector.broadcast %cst_33 : f32 to vector<4x32xf32>
      %c0_34 = arith.constant 0 : index
      %c0_35 = arith.constant 0 : index
      %51 = vector.load %arg8[%c0_34, %c0_35] : memref<4x32xf32, #tpu.memory_space<vmem>>, vector<4x32xf32>
      tpu.vector_store %arg8[%c0_34, %c0_35], %50 {strides = array<i32>} : memref<4x32xf32, #tpu.memory_space<vmem>>, vector<4x32xf32>,
      %cst_36 = arith.constant 0.000000e+00 : f32
      %52 = vector.broadcast %cst_36 : f32 to vector<4x32xf32>
      %c0_37 = arith.constant 0 : index
      %c0_38 = arith.constant 0 : index
      %53 = vector.load %arg9[%c0_37, %c0_38] : memref<4x32xf32, #tpu.memory_space<vmem>>, vector<4x32xf32>
      tpu.vector_store %arg9[%c0_37, %c0_38], %52 {strides = array<i32>} : memref<4x32xf32, #tpu.memory_space<vmem>>, vector<4x32xf32>,
      %cst_39 = arith.constant 0.000000e+00 : f32
      %54 = vector.broadcast %cst_39 : f32 to vector<4x32xf32>
      %c0_40 = arith.constant 0 : index
      %c0_41 = arith.constant 0 : index
      %55 = vector.load %arg10[%c0_40, %c0_41] : memref<4x32xf32, #tpu.memory_space<vmem>>, vector<4x32xf32>
      tpu.vector_store %arg10[%c0_40, %c0_41], %54 {strides = array<i32>} : memref<4x32xf32, #tpu.memory_space<vmem>>, vector<4x32xf32>,
    } else {
    }
    %c0_i32_2 = arith.constant 0 : i32
    %5 = arith.cmpi eq, %arg1, %c0_i32_2 : i32
    %6 = arith.extui %5 : i1 to i32
    %cst = arith.constant -1.000000e+30 : f32
    %c0_i32_3 = arith.constant 0 : i32
    %7 = arith.cmpi ne, %6, %c0_i32_3 : i32
    scf.if %7 {
      %c0_33 = arith.constant 0 : index
      %c0_34 = arith.constant 0 : index
      %50 = vector.load %arg8[%c0_33, %c0_34] : memref<4x32xf32, #tpu.memory_space<vmem>>, vector<4x32xf32>
      %c0_35 = arith.constant 0 : index
      %c0_36 = arith.constant 0 : index
      %51 = vector.load %arg4[%c0_35, %c0_36] : memref<32x128xf32, #tpu.memory_space<vmem>>, vector<32x128xf32>
      %cst_37 = arith.constant dense<0.000000e+00> : vector<4x128xf32>
      %52 = tpu.matmul %50, %51, %cst_37 {dimension_numbers = #tpu.dot_dimension_numbers<[1], [0], [0], [1], [0, 0, 1, 1], [], []>} : vector<4x32xf32>, vector<32x128xf32>, vector<4x128xf32> -> vector<4x128xf32>
      %c0_38 = arith.constant 0 : index
      %c0_39 = arith.constant 0 : index
      %53 = vector.load %arg10[%c0_38, %c0_39] : memref<4x32xf32, #tpu.memory_space<vmem>>, vector<4x32xf32>
      %c0_40 = arith.constant 0 : index
      %c0_41 = arith.constant 0 : index
      %54 = vector.load %arg5[%c0_40, %c0_41] : memref<32x128xf32, #tpu.memory_space<vmem>>, vector<32x128xf32>
      %cst_42 = arith.constant dense<0.000000e+00> : vector<4x128xf32>
      %55 = tpu.matmul %53, %54, %cst_42 {dimension_numbers = #tpu.dot_dimension_numbers<[1], [0], [0], [1], [0, 0, 1, 1], [], []>} : vector<4x32xf32>, vector<32x128xf32>, vector<4x128xf32> -> vector<4x128xf32>
      %56 = arith.addf %52, %55 : vector<4x128xf32>
      %c0_43 = arith.constant 0 : index
      %c0_44 = arith.constant 0 : index
      %57 = vector.load %arg6[%c0_43, %c0_44] : memref<1x128xf32, #tpu.memory_space<vmem>>, vector<1x128xf32>
      %58 = vector.broadcast %57 : vector<1x128xf32> to vector<4x128xf32>
      %59 = arith.addf %56, %58 : vector<4x128xf32>
      %60 = vector.extract_strided_slice %59 {offsets = [0, 0], sizes = [4, 32], strides = [1, 1]} : vector<4x128xf32> to vector<4x32xf32>
      %61 = arith.negf %60 : vector<4x32xf32>
      %62 = math.exp %61 : vector<4x32xf32>
      %cst_45 = arith.constant 1.000000e+00 : f32
      %63 = vector.broadcast %cst_45 : f32 to vector<4x32xf32>
      %64 = arith.addf %63, %62 : vector<4x32xf32>
      %65 = arith.divf %63, %64 : vector<4x32xf32>
      %66 = vector.extract_strided_slice %59 {offsets = [0, 32], sizes = [4, 32], strides = [1, 1]} : vector<4x128xf32> to vector<4x32xf32>
      %67 = arith.negf %66 : vector<4x32xf32>
      %68 = math.exp %67 : vector<4x32xf32>
      %cst_46 = arith.constant 1.000000e+00 : f32
      %69 = vector.broadcast %cst_46 : f32 to vector<4x32xf32>
      %70 = arith.addf %69, %68 : vector<4x32xf32>
      %71 = arith.divf %69, %70 : vector<4x32xf32>
      %72 = vector.extract_strided_slice %59 {offsets = [0, 64], sizes = [4, 32], strides = [1, 1]} : vector<4x128xf32> to vector<4x32xf32>
      %73 = math.tanh %72 : vector<4x32xf32>
      %74 = vector.extract_strided_slice %59 {offsets = [0, 96], sizes = [4, 32], strides = [1, 1]} : vector<4x128xf32> to vector<4x32xf32>
      %75 = arith.negf %74 : vector<4x32xf32>
      %76 = math.exp %75 : vector<4x32xf32>
      %cst_47 = arith.constant 1.000000e+00 : f32
      %77 = vector.broadcast %cst_47 : f32 to vector<4x32xf32>
      %78 = arith.addf %77, %76 : vector<4x32xf32>
      %79 = arith.divf %77, %78 : vector<4x32xf32>
      %c0_48 = arith.constant 0 : index
      %c0_49 = arith.constant 0 : index
      %80 = vector.load %arg9[%c0_48, %c0_49] : memref<4x32xf32, #tpu.memory_space<vmem>>, vector<4x32xf32>
      %81 = arith.mulf %71, %80 : vector<4x32xf32>
      %82 = arith.mulf %65, %73 : vector<4x32xf32>
      %83 = arith.addf %81, %82 : vector<4x32xf32>
      %c0_50 = arith.constant 0 : index
      %c0_51 = arith.constant 0 : index
      %84 = vector.load %arg9[%c0_50, %c0_51] : memref<4x32xf32, #tpu.memory_space<vmem>>, vector<4x32xf32>
      tpu.vector_store %arg9[%c0_50, %c0_51], %83 {strides = array<i32>} : memref<4x32xf32, #tpu.memory_space<vmem>>, vector<4x32xf32>,
      %85 = math.tanh %83 : vector<4x32xf32>
      %86 = arith.mulf %79, %85 : vector<4x32xf32>
      %c0_52 = arith.constant 0 : index
      %c0_53 = arith.constant 0 : index
      %87 = vector.load %arg8[%c0_52, %c0_53] : memref<4x32xf32, #tpu.memory_space<vmem>>, vector<4x32xf32>
      tpu.vector_store %arg8[%c0_52, %c0_53], %86 {strides = array<i32>} : memref<4x32xf32, #tpu.memory_space<vmem>>, vector<4x32xf32>,
      %88 = vector.broadcast %cst : f32 to vector<4x1xf32>
      %c0_54 = arith.constant 0 : index
      %c0_55 = arith.constant 0 : index
      %89 = vector.load %arg11[%c0_54, %c0_55] : memref<4x1xf32, #tpu.memory_space<vmem>>, vector<4x1xf32>
      tpu.vector_store %arg11[%c0_54, %c0_55], %88 {strides = array<i32>} : memref<4x1xf32, #tpu.memory_space<vmem>>, vector<4x1xf32>,
      %cst_56 = arith.constant 0.000000e+00 : f32
      %90 = vector.broadcast %cst_56 : f32 to vector<4x1xf32>
      %c0_57 = arith.constant 0 : index
      %c0_58 = arith.constant 0 : index
      %91 = vector.load %arg12[%c0_57, %c0_58] : memref<4x1xf32, #tpu.memory_space<vmem>>, vector<4x1xf32>
      tpu.vector_store %arg12[%c0_57, %c0_58], %90 {strides = array<i32>} : memref<4x1xf32, #tpu.memory_space<vmem>>, vector<4x1xf32>,
      %cst_59 = arith.constant 0.000000e+00 : f32
      %92 = vector.broadcast %cst_59 : f32 to vector<4x32xf32>
      %c0_60 = arith.constant 0 : index
      %c0_61 = arith.constant 0 : index
      %93 = vector.load %arg13[%c0_60, %c0_61] : memref<4x32xf32, #tpu.memory_space<vmem>>, vector<4x32xf32>
      tpu.vector_store %arg13[%c0_60, %c0_61], %92 {strides = array<i32>} : memref<4x32xf32, #tpu.memory_space<vmem>>, vector<4x32xf32>,
    } else {
    }
    %c0 = arith.constant 0 : index
    %c0_4 = arith.constant 0 : index
    %8 = vector.load %arg8[%c0, %c0_4] : memref<4x32xf32, #tpu.memory_space<vmem>>, vector<4x32xf32>
    %c0_5 = arith.constant 0 : index
    %c0_6 = arith.constant 0 : index
    %9 = vector.load %arg2[%c0_5, %c0_6] : memref<256x32xf32, #tpu.memory_space<vmem>>, vector<256x32xf32>
    %c0_7 = arith.constant 0 : index
    %c0_8 = arith.constant 0 : index
    %10 = vector.load %arg3[%c0_7, %c0_8] : memref<1x256xi32, #tpu.memory_space<vmem>>, vector<1x256xi32>
    %11 = tpu.iota {dimensions = array<i32: 0>} : vector<4x256xi32>
    %12 = vector.broadcast %10 : vector<1x256xi32> to vector<4x256xi32>
    %13 = arith.cmpi eq, %11, %12 : vector<4x256xi32>
    %cst_9 = arith.constant dense<0.000000e+00> : vector<4x256xf32>
    %14 = tpu.matmul %8, %9, %cst_9 {dimension_numbers = #tpu.dot_dimension_numbers<[1], [1], [0], [0], [0, 0, 1, 0], [], []>} : vector<4x32xf32>, vector<256x32xf32>, vector<4x256xf32> -> vector<4x256xf32>
    %cst_10 = arith.constant -1.000000e+30 : f32
    %15 = vector.broadcast %cst_10 : f32 to vector<4x256xf32>
    %16 = arith.select %13, %14, %15 : vector<4x256xi1>, vector<4x256xf32>
    %cst_11 = arith.constant dense<0xFF800000> : vector<4xf32>
    %17 = vector.multi_reduction <maximumf>, %16, %cst_11 [1] : vector<4x256xf32> to vector<4xf32>
    %18 = vector.shape_cast %17 : vector<4xf32> to vector<4x1xf32>
    %c0_12 = arith.constant 0 : index
    %c0_13 = arith.constant 0 : index
    %19 = vector.load %arg11[%c0_12, %c0_13] : memref<4x1xf32, #tpu.memory_space<vmem>>, vector<4x1xf32>
    %20 = arith.maximumf %19, %18 : vector<4x1xf32>
    %c0_14 = arith.constant 0 : index
    %c0_15 = arith.constant 0 : index
    %21 = vector.load %arg11[%c0_14, %c0_15] : memref<4x1xf32, #tpu.memory_space<vmem>>, vector<4x1xf32>
    %22 = arith.subf %21, %20 : vector<4x1xf32>
    %23 = math.exp %22 : vector<4x1xf32>
    %24 = vector.broadcast %20 : vector<4x1xf32> to vector<4x256xf32>
    %25 = arith.subf %14, %24 : vector<4x256xf32>
    %cst_16 = arith.constant -1.000000e+30 : f32
    %26 = vector.broadcast %cst_16 : f32 to vector<4x256xf32>
    %27 = arith.select %13, %25, %26 : vector<4x256xi1>, vector<4x256xf32>
    %28 = math.exp %27 : vector<4x256xf32>
    %c0_17 = arith.constant 0 : index
    %c0_18 = arith.constant 0 : index
    %29 = vector.load %arg12[%c0_17, %c0_18] : memref<4x1xf32, #tpu.memory_space<vmem>>, vector<4x1xf32>
    %30 = arith.mulf %23, %29 : vector<4x1xf32>
    %cst_19 = arith.constant dense<0.000000e+00> : vector<4xf32>
    %31 = vector.multi_reduction <add>, %28, %cst_19 [1] : vector<4x256xf32> to vector<4xf32>
    %32 = vector.shape_cast %31 : vector<4xf32> to vector<4x1xf32>
    %33 = arith.addf %30, %32 : vector<4x1xf32>
    %c0_20 = arith.constant 0 : index
    %c0_21 = arith.constant 0 : index
    %34 = vector.load %arg12[%c0_20, %c0_21] : memref<4x1xf32, #tpu.memory_space<vmem>>, vector<4x1xf32>
    tpu.vector_store %arg12[%c0_20, %c0_21], %33 {strides = array<i32>} : memref<4x1xf32, #tpu.memory_space<vmem>>, vector<4x1xf32>,
    %c0_22 = arith.constant 0 : index
    %c0_23 = arith.constant 0 : index
    %35 = vector.load %arg13[%c0_22, %c0_23] : memref<4x32xf32, #tpu.memory_space<vmem>>, vector<4x32xf32>
    %36 = vector.broadcast %23 : vector<4x1xf32> to vector<4x32xf32>
    %37 = arith.mulf %36, %35 : vector<4x32xf32>
    %cst_24 = arith.constant dense<0.000000e+00> : vector<4x32xf32>
    %38 = tpu.matmul %28, %9, %cst_24 {dimension_numbers = #tpu.dot_dimension_numbers<[1], [0], [0], [1], [0, 0, 1, 1], [], []>} : vector<4x256xf32>, vector<256x32xf32>, vector<4x32xf32> -> vector<4x32xf32>
    %39 = arith.addf %37, %38 : vector<4x32xf32>
    %c0_25 = arith.constant 0 : index
    %c0_26 = arith.constant 0 : index
    %40 = vector.load %arg13[%c0_25, %c0_26] : memref<4x32xf32, #tpu.memory_space<vmem>>, vector<4x32xf32>
    tpu.vector_store %arg13[%c0_25, %c0_26], %39 {strides = array<i32>} : memref<4x32xf32, #tpu.memory_space<vmem>>, vector<4x32xf32>,
    %c0_27 = arith.constant 0 : index
    %c0_28 = arith.constant 0 : index
    %41 = vector.load %arg11[%c0_27, %c0_28] : memref<4x1xf32, #tpu.memory_space<vmem>>, vector<4x1xf32>
    tpu.vector_store %arg11[%c0_27, %c0_28], %20 {strides = array<i32>} : memref<4x1xf32, #tpu.memory_space<vmem>>, vector<4x1xf32>,
    %c0_i32_29 = arith.constant 0 : i32
    %42 = arith.cmpi eq, %arg1, %c0_i32_29 : i32
    %43 = arith.extui %42 : i1 to i32
    %c0_i32_30 = arith.constant 0 : i32
    %44 = arith.cmpi ne, %43, %c0_i32_30 : i32
    scf.if %44 {
      %c0_33 = arith.constant 0 : index
      %c0_34 = arith.constant 0 : index
      %50 = vector.load %arg13[%c0_33, %c0_34] : memref<4x32xf32, #tpu.memory_space<vmem>>, vector<4x32xf32>
      %c0_35 = arith.constant 0 : index
      %c0_36 = arith.constant 0 : index
      %51 = vector.load %arg12[%c0_35, %c0_36] : memref<4x1xf32, #tpu.memory_space<vmem>>, vector<4x1xf32>
      %cst_37 = arith.constant 1.000000e-16 : f32
      %52 = vector.broadcast %cst_37 : f32 to vector<4x1xf32>
      %53 = arith.addf %51, %52 : vector<4x1xf32>
      %54 = vector.broadcast %53 : vector<4x1xf32> to vector<4x32xf32>
      %55 = arith.divf %50, %54 : vector<4x32xf32>
      %c0_38 = arith.constant 0 : index
      %c0_39 = arith.constant 0 : index
      %56 = vector.load %arg10[%c0_38, %c0_39] : memref<4x32xf32, #tpu.memory_space<vmem>>, vector<4x32xf32>
      tpu.vector_store %arg10[%c0_38, %c0_39], %55 {strides = array<i32>} : memref<4x32xf32, #tpu.memory_space<vmem>>, vector<4x32xf32>,
    } else {
    }
    %c0_i32_31 = arith.constant 0 : i32
    %45 = arith.cmpi eq, %arg1, %c0_i32_31 : i32
    %c2_i32 = arith.constant 2 : i32
    %46 = arith.cmpi eq, %arg0, %c2_i32 : i32
    %47 = arith.andi %45, %46 : i1
    %48 = arith.extui %47 : i1 to i32
    %c0_i32_32 = arith.constant 0 : i32
    %49 = arith.cmpi ne, %48, %c0_i32_32 : i32
    scf.if %49 {
      %c0_33 = arith.constant 0 : index
      %c0_34 = arith.constant 0 : index
      %50 = vector.load %arg8[%c0_33, %c0_34] : memref<4x32xf32, #tpu.memory_space<vmem>>, vector<4x32xf32>
      %c0_35 = arith.constant 0 : index
      %c0_36 = arith.constant 0 : index
      %51 = vector.load %arg7[%c0_35, %c0_36] : memref<4x64xf32, #tpu.memory_space<vmem>>, vector<4x32xf32>
      tpu.vector_store %arg7[%c0_35, %c0_36], %50 {strides = array<i32>} : memref<4x64xf32, #tpu.memory_space<vmem>>, vector<4x32xf32>,
      %c0_37 = arith.constant 0 : index
      %c0_38 = arith.constant 0 : index
      %52 = vector.load %arg10[%c0_37, %c0_38] : memref<4x32xf32, #tpu.memory_space<vmem>>, vector<4x32xf32>
      %c0_39 = arith.constant 0 : index
      %c32 = arith.constant 32 : index
      %53 = vector.load %arg7[%c0_39, %c32] : memref<4x64xf32, #tpu.memory_space<vmem>>, vector<4x32xf32>
      tpu.vector_store %arg7[%c0_39, %c32], %52 {strides = array<i32>} : memref<4x64xf32, #tpu.memory_space<vmem>>, vector<4x32xf32>,
    } else {
    }
    return
  }
  func.func @transform_0(%arg0: i32, %arg1: i32) -> (i32, i32) {
    %c0_i32 = arith.constant 0 : i32
    %c0_i32_0 = arith.constant 0 : i32
    return %arg1, %c0_i32 : i32, i32
  }
  func.func @transform_1(%arg0: i32, %arg1: i32) -> (i32, i32) {
    %c0_i32 = arith.constant 0 : i32
    %c0_i32_0 = arith.constant 0 : i32
    return %c0_i32, %arg1 : i32, i32
  }
  func.func @transform_2(%arg0: i32, %arg1: i32) -> (i32, i32) {
    %c0_i32 = arith.constant 0 : i32
    %c0_i32_0 = arith.constant 0 : i32
    %c0_i32_1 = arith.constant 0 : i32
    return %c0_i32, %c0_i32_0 : i32, i32
  }
  func.func @transform_3(%arg0: i32, %arg1: i32) -> (i32, i32) {
    %c0_i32 = arith.constant 0 : i32
    %c0_i32_0 = arith.constant 0 : i32
    %c0_i32_1 = arith.constant 0 : i32
    return %c0_i32, %c0_i32_0 : i32, i32
  }
  func.func @transform_4(%arg0: i32, %arg1: i32) -> (i32, i32) {
    %c0_i32 = arith.constant 0 : i32
    %c0_i32_0 = arith.constant 0 : i32
    %c0_i32_1 = arith.constant 0 : i32
    return %c0_i32, %c0_i32_0 : i32, i32
  }
  func.func @transform_5(%arg0: i32, %arg1: i32) -> (i32, i32) {
    %c0_i32 = arith.constant 0 : i32
    %c0_i32_0 = arith.constant 0 : i32
    %c0_i32_1 = arith.constant 0 : i32
    return %c0_i32, %c0_i32_0 : i32, i32
  }
}

</mosaic_0001>

<bundles_post_ra>
// kernel: tpu_custom_call.1
= control target key start
LH: loop header
LB: loop body
LE: loop exit
PB: predicated region body
PF: predicated region fallthrough
CT: control target
= control target key end

     0   :  { %10 = vsyncpa [#allocation9], 0  ;;  %s1295_s18 = smov 0   ;;  %s1297_s19 = smov 0   ;;  %s1559_s0 = inlined_call_operand.vmem [shape: f32[256,32], index: 0, kind: input, shape index: {}]   ;;  %s1560_s1 = inlined_call_operand.vmem [shape: s32[1,256], index: 1, kind: input, shape index: {}]   ;;  %s1561_s2 = inlined_call_operand.vmem [shape: f32[32,128], index: 2, kind: input, shape index: {}]   ;;  %s1562_s3 = inlined_call_operand.vmem [shape: f32[32,128], index: 3, kind: input, shape index: {}]   ;;  %s1563_s4 = inlined_call_operand.vmem [shape: f32[1,128], index: 4, kind: input, shape index: {}]   ;;  %s1564_s5 = inlined_call_operand.hbm [shape: f32[4,64], index: 5, kind: output, shape index: {}]  }
   0x1   :  { %s1299_s20 = smov 0  }
   0x2 LB: > { %s898_s21 = sadd.s32 4294967295, %s1252_s20   ;;  %s28_s22 = sadd.s32 1, %s1248_s19  ;;  %s1252_s20 = sphi %s1299_s20, %s16_s20   ;;  %s1248_s19 = sphi %s1297_s19, %s1569_s19   ;;  %s1244_s18 = sphi %s1295_s18, %s1568_s18  }
   0x3   : > { %p30_p0 = scmp.ge.s32.totalorder %s28_s22, 3  ;;  %p902_p1 = scmp.ge.s32.totalorder %s1252_s20, 1 }
   0x4   : > { %p206_p2 = scmp.lt.s32.totalorder %s1252_s20, 4 }
   0x5   : > { %s1571_s22 = smov (%p30_p0, %s28_s22), 0 }
   0x6   : > { %p207_p3 = pnand %p902_p1, %p206_p2 }
   0x7   : > { %p244_p4 = scmp.eq.s32.totalorder (!%p207_p3), %s1244_s18, 0 }
   0x8   : > { %210 = sbr.rel (%p207_p3) target bundleno = 1706 (0x6aa), region = 40 }
   0xf   : > { %249 = sbr.rel (!%p244_p4) target bundleno = 22 (0x16), region = 44  ;;  %vm250_vm0 = vcmask (%p244_p4), 257024   ;;  %v1254_v0 = vmov (%p244_p4), 0.0  }
  0x10   : > { %251 = vst.msk [vmem:[#allocation2] sm:$0xf] (%p244_p4), %vm250_vm0, %v1254_v0  ;;  %252 = vst.msk [vmem:[#allocation3] sm:$0xf] (%p244_p4), %vm250_vm0, %v1254_v0 }
  0x11   : > { %253 = vst.msk [vmem:[#allocation4] sm:$0xf] (%p244_p4), %vm250_vm0, %v1254_v0 }
  0x16 PF: > { %v263_v1 = vld [vmem:[%s1562_s3] sm:$0xff]  ;;  %v264_v2 = vld [vmem:[%s1562_s3 + $0x8] sm:$0xff]  ;;  %v265_v3 = vld [vmem:[%s1562_s3 + $0x10] sm:$0xff]  ;;  %v1255_v4 = vmov 0.0|0.0   ;;  %vm1256_vm1 = vmmov 0   ;;  %v1257_v7 = vmov 0.0  }
  0x17   : > { %1049 = vmatprep.subr.bf16.mxu1 %v1255_v4  ;;  %v1050_v5 = vpack.c.bf16 %v264_v2, %v263_v1  ;;  %v266_v6 = vld [vmem:[%s1562_s3 + $0x18] sm:$0xff]  ;;  %1035 = vmatprep.mubr.msk.f32.mxu1 %vm1256_vm1, %v1257_v7  ;;  %vm449_vm2 = vcmask 257024   ;;  %vm462_vm3 = vcmask 3072   ;;  %v258_v9 = vld [vmem:[%s1561_s2] sm:$0xff]  ;;  %v259_v10 = vld [vmem:[%s1561_s2 + $0x8] sm:$0xff]  ;;  %vm267_vm4 = vcmask 261120  }
  0x18   : > { %464 = vst.msk [vmem:[#allocation6] sm:$0xf] %vm462_vm3, %v1257_v7  ;;  %v1053_v8 = vpack.c.bf16 %v266_v6, %v265_v3  ;;  %v262_v11 = vld [vmem:[#allocation4] sm:$0xf]  ;;  %v1056_v12 = vpack.c.bf16 %v259_v10, %v258_v9  ;;  %v260_v13 = vld [vmem:[%s1561_s2 + $0x10] sm:$0xff]  ;;  %v261_v14 = vld [vmem:[%s1561_s2 + $0x18] sm:$0xff] }
  0x19   : > { %465 = vst.msk [vmem:[#allocation7] sm:$0xf] %vm449_vm2, %v1257_v7  ;;  %1051 = vmatpush3.bf16.msra.mxu1 %v1050_v5  ;;  %v1059_v15 = vpack.c.bf16 %v261_v14, %v260_v13  ;;  %v257_v16 = vld [vmem:[#allocation2] sm:$0xf]  ;;  %s1258_s16 = smov 64   ;;  %s1259_s17 = smov 32   ;;  %vm1361_vm5 = vmpackc.low %vm267_vm4, %vm267_vm4 }
  0x1a   : > { %1052 = vmatprep.subr.bf16.mxu1 %v1255_v4  ;;  %v906_v20 = vld [vmem:[%s1563_s4] ss:$0 sm:$0xff]  ;;  %v429_v25 = vld [vmem:[#allocation3] sm:$0xf]  ;;  %v484_v38 = vld [vmem:[%s1559_s0 + $0x88] sm:$0xff]  ;;  %vm685_vm8 = vcmask 1043456  }
  0x1b   : > { %v483_v37 = vld [vmem:[%s1559_s0 + $0x80] sm:$0xff]  ;;  %v468_v41 = vld [vmem:[%s1559_s0 + $0x8] sm:$0xff]  ;;  %v485_v42 = vld [vmem:[%s1559_s0 + $0x90] sm:$0xff]  ;;  %p814_p5 = scmp.eq.s32.totalorder %s1244_s18, 2 }
  0x1c   : > { %v467_v39 = vld [vmem:[%s1559_s0] sm:$0xff]  ;;  %v1061_v40 = vpack.c.bf16 %v484_v38, %v483_v37  ;;  %v486_v43 = vld [vmem:[%s1559_s0 + $0x98] sm:$0xff]  ;;  %v469_v46 = vld [vmem:[%s1559_s0 + $0x10] sm:$0xff]  ;;  %s1263_s8 = smov (%p814_p5), 32   ;;  %vm826_vm9 = vcmask (%p814_p5), 519424  }
  0x1d   : > { %1054 = vmatpush3.bf16.msra.mxu1 %v1053_v8  ;;  %v1064_v44 = vpack.c.bf16 %v468_v41, %v467_v39  ;;  %v1067_v45 = vpack.c.bf16 %v486_v43, %v485_v42  ;;  %v470_v47 = vld [vmem:[%s1559_s0 + $0x18] sm:$0xff]  ;;  %v487_v48 = vld [vmem:[%s1559_s0 + $0xa0] sm:$0xff]  ;;  %v488_v49 = vld [vmem:[%s1559_s0 + $0xa8] sm:$0xff]  ;;  %v1261_v42 = vmov 0  }
  0x1e   : > { %1055 = vmatprep.subr.bf16.mxu1 %v1255_v4  ;;  %1063 = vmatprep.subr.msk.bf16.mxu0 %vm1361_vm5, %v1061_v40  ;;  %v1070_v50 = vpack.c.bf16 %v470_v47, %v469_v46  ;;  %v1073_v51 = vpack.c.bf16 %v488_v49, %v487_v48  ;;  %v471_v52 = vld [vmem:[%s1559_s0 + $0x20] sm:$0xff]  ;;  %v472_v53 = vld [vmem:[%s1559_s0 + $0x28] sm:$0xff]  ;;  %v489_v54 = vld [vmem:[%s1559_s0 + $0xb0] sm:$0xff] }
  0x1f   : > { %1066 = vmatpush3.bf16.xpose.msk.msra.mxu0 %vm1361_vm5, %v1064_v44  ;;  %v490_v55 = vld [vmem:[%s1559_s0 + $0xb8] sm:$0xff]  ;;  %v1076_v57 = vpack.c.bf16 %v472_v53, %v471_v52  ;;  %v473_v59 = vld [vmem:[%s1559_s0 + $0x30] sm:$0xff]  ;;  %v491_v61 = vld [vmem:[%s1559_s0 + $0xc0] sm:$0xff]  ;;  %1182 = vset.pattern.permute.xlu0 %v1261_v42 }
  0x20   : > { %1036 = vmatmul.mubr.msk.f32.vlgmr.msra.gmra.mrb[0].mxu1 %vm267_vm4, %v262_v11  ;;  %1069 = vmatprep.subr.msk.bf16.mxu0 %vm1361_vm5, %v1067_v45  ;;  %v1079_v58 = vpack.c.bf16 %v490_v55, %v489_v54  ;;  %v474_v60 = vld [vmem:[%s1559_s0 + $0x38] sm:$0xff]  ;;  %v492_v62 = vld [vmem:[%s1559_s0 + $0xc8] sm:$0xff]  ;;  %v475_v1 = vld [vmem:[%s1559_s0 + $0x40] sm:$0xff] }
  0x21   : > { %1057 = vmatpush3.bf16.msra.mxu1 %v1056_v12  ;;  %1046 = vmatprep.mubr.msk.f32.mxu1 %vm1256_vm1, %v1257_v7  ;;  %v1082_v63 = vpack.c.bf16 %v474_v60, %v473_v59  ;;  %v1085_v0 = vpack.c.bf16 %v492_v62, %v491_v61  ;;  %v476_v2 = vld [vmem:[%s1559_s0 + $0x48] sm:$0xff]  ;;  %v493_v3 = vld [vmem:[%s1559_s0 + $0xd0] sm:$0xff]  ;;  %v478_v8 = vld [vmem:[%s1559_s0 + $0x58] sm:$0xff] }
  0x22   : > { %1058 = vmatprep.subr.bf16.mxu1 %v1255_v4  ;;  %v494_v4 = vld [vmem:[%s1559_s0 + $0xd8] sm:$0xff]  ;;  %v1088_v5 = vpack.c.bf16 %v476_v2, %v475_v1  ;;  %v477_v7 = vld [vmem:[%s1559_s0 + $0x50] sm:$0xff]  ;;  %v495_v9 = vld [vmem:[%s1559_s0 + $0xe0] sm:$0xff]  ;;  %1183 = vset.pattern.permute.xlu1 %v1261_v42 }
  0x23   : > { %v1091_v6 = vpack.c.bf16 %v494_v4, %v493_v3  ;;  %v496_v10 = vld [vmem:[%s1559_s0 + $0xe8] sm:$0xff]  ;;  %v1094_v11 = vpack.c.bf16 %v478_v8, %v477_v7  ;;  %v479_v13 = vld [vmem:[%s1559_s0 + $0x60] sm:$0xff]  ;;  %v709_v62 = vld [vmem:[#allocation6] sm:$0xf] }
  0x24   : > { %v1097_v12 = vpack.c.bf16 %v496_v10, %v495_v9  ;;  %v480_v14 = vld [vmem:[%s1559_s0 + $0x68] sm:$0xff]  ;;  %v719_v4 = vld [vmem:[#allocation7] sm:$0xf] }
  0x25   : > { %1060 = vmatpush3.bf16.msra.mxu1 %v1059_v15  ;;  %v1100_v15 = vpack.c.bf16 %v480_v14, %v479_v13 }
  0x26   : > { %1110 = vmatprep.subr.bf16.mxu1 %v1061_v40 }
  0x27   : > { %1072 = vmatpush3.bf16.xpose.msk.msra.mxu0 %vm1361_vm5, %v1070_v50 }
  0x28   : > { %1047 = vmatmul.mubr.msk.f32.vlgmr.msra.gmra.mrb[2].mxu1 %vm267_vm4, %v257_v16  ;;  %1075 = vmatprep.subr.msk.bf16.mxu0 %vm1361_vm5, %v1073_v51  ;;  %v497_v16 = vld [vmem:[%s1559_s0 + $0xf0] sm:$0xff] }
  0x29   : > { %1112 = vmatpush3.bf16.msra.mxu1 %v1064_v44 }
  0x2a   : > { %1114 = vmatprep.subr.bf16.mxu1 %v1067_v45 }
  0x2d   : > { %1116 = vmatpush3.bf16.msra.mxu1 %v1070_v50 }
  0x2e   : > { %1118 = vmatprep.subr.bf16.mxu1 %v1073_v51 }
  0x2f   : > { %1078 = vmatpush3.bf16.xpose.msk.msra.mxu0 %vm1361_vm5, %v1076_v57 }
  0x30   : > { %1081 = vmatprep.subr.msk.bf16.mxu0 %vm1361_vm5, %v1079_v58 }
  0x31   : > { %1120 = vmatpush3.bf16.msra.mxu1 %v1076_v57 }
  0x32   : > { %1122 = vmatprep.subr.bf16.mxu1 %v1079_v58 }
  0x35   : > { %1124 = vmatpush3.bf16.msra.mxu1 %v1082_v63 }
  0x36   : > { %1126 = vmatprep.subr.bf16.mxu1 %v1085_v0 }
  0x37   : > { %1084 = vmatpush3.bf16.xpose.msk.msra.mxu0 %vm1361_vm5, %v1082_v63 }
  0x38   : > { %1087 = vmatprep.subr.msk.bf16.mxu0 %vm1361_vm5, %v1085_v0 }
  0x39   : > { %1128 = vmatpush3.bf16.msra.mxu1 %v1088_v5 }
  0x3a   : > { %1130 = vmatprep.subr.bf16.mxu1 %v1091_v6 }
  0x3d   : > { %1132 = vmatpush3.bf16.msra.mxu1 %v1094_v11 }
  0x3e   : > { %1134 = vmatprep.subr.bf16.mxu1 %v1097_v12 }
  0x3f   : > { %1090 = vmatpush3.bf16.xpose.msk.msra.mxu0 %vm1361_vm5, %v1088_v5 }
  0x40   : > { %1093 = vmatprep.subr.msk.bf16.mxu0 %vm1361_vm5, %v1091_v6 }
  0x41   : > { %1136 = vmatpush3.bf16.msra.mxu1 %v1100_v15 }
  0x47   : > { %1096 = vmatpush3.bf16.xpose.msk.msra.mxu0 %vm1361_vm5, %v1094_v11 }
  0x48   : > { %1099 = vmatprep.subr.msk.bf16.mxu0 %vm1361_vm5, %v1097_v12 }
  0x4f   : > { %1102 = vmatpush3.bf16.xpose.msk.msra.mxu0 %vm1361_vm5, %v1100_v15 }
  0xf3   : > { %v337_v17 = vpop.f32.mrb[0].mxu1 }
  0xf4   : > { %v1037_v18 = vpop.f32.mrb[1].mxu1 }
  0xfb   : > { %v410_v19 = vpop.f32.mrb[2].mxu1 }
  0xfc   : > { %v411_v21 = vadd.f32 %v410_v19, %v337_v17  ;;  %v1048_v22 = vpop.f32.mrb[3].mxu1  ;;  %v498_v17 = vld [vmem:[%s1559_s0 + $0xf8] sm:$0xff]  ;;  %v481_v19 = vld [vmem:[%s1559_s0 + $0x70] sm:$0xff] }
  0xfd   : > { %v1103_v18 = vpack.c.bf16 %v498_v17, %v497_v16 }
  0xfe   : > { %v421_v23 = vadd.f32 %v906_v20, %v411_v21  ;;  %v482_v20 = vld [vmem:[%s1559_s0 + $0x78] sm:$0xff] }
  0xff   : > { %v1106_v21 = vpack.c.bf16 %v482_v20, %v481_v19  ;;  %1105 = vmatprep.subr.msk.bf16.mxu0 %vm1361_vm5, %v1103_v18  ;;  %1138 = vmatprep.subr.bf16.mxu1 %v1103_v18 }
 0x100   : > { %1184 = vtanh.f32 %v421_v23  ;;  %v907_v26 = vmul.f32 -1.442695, %v421_v23 }
 0x101   : > { %1108 = vmatpush3.bf16.xpose.msk.msra.mxu0 %vm1361_vm5, %v1106_v21  ;;  %1140 = vmatpush3.bf16.msra.mxu1 %v1106_v21 }
 0x102   : > { %1186 = vpow2.f32 %v907_v26  ;;  %v1260_v26 = vmov -1e+30  }
 0x103   : > { %463 = vst.msk [vmem:[#allocation5] sm:$0xf] %vm462_vm3, %v1260_v26 }
 0x10a   : > { %v1185_v24 = vpop.eup %1184  ;;  %v691_v43 = vld [vmem:[#allocation5] sm:$0xf] }
 0x10b   : > { %436 = vrot.lane.b32.xlu0 %v1185_v24, %s1258_s16 }
 0x10c   : > { %v1187_v27 = vpop.eup %1186 }
 0x10d   : > { %v425_v28 = vadd.f32 1.0, %v1187_v27  ;;  %v500_v27 = vlaneseq }
 0x10f   : > { %431 = vrot.lane.b32.xlu0 %v429_v25, %s1259_s17  ;;  %1188 = vrcp.f32 %v425_v28  ;;  %v501_v28 = vshrl.u32 %v500_v27, 7 }
 0x119   : > { %v1352_v29 = vpop.eup %1188 }
 0x17d   : > { %v437_v30 = vpop.permute.xlu0 %436 }
 0x17e   : > { %v439_v31 = vmul.f32 %v1352_v29, %v437_v30  ;;  %v504_v30 = vsub.s32 0, %v501_v28 }
 0x180   : > { %441 = vrot.lane.b32.xlu1 %v439_v31, %s1259_s17  ;;  %v508_v31 = vsub.s32 1, %v501_v28 }
 0x181   : > { %v432_v32 = vpop.permute.xlu0 %431 }
 0x182   : > { %v434_v33 = vmul.f32 %v1352_v29, %v432_v32 }
 0x1f2   : > { %v442_v34 = vpop.permute.xlu1 %441 }
 0x1f3   : > { %v1357_v35 = vadd.f32 %v442_v34, %v434_v33 }
 0x1f5   : > { %1190 = vtanh.f32 %v1357_v35 }
 0x1ff   : > { %v1191_v56 = vpop.eup %1190 }
 0x200   : > { %453 = vrot.lane.b32.xlu1 %v1191_v56, %s1258_s16 }
 0x272   : > { %v454_v22 = vpop.permute.xlu1 %453 }
 0x273   : > { %v456_v23 = vmul.f32 %v1352_v29, %v454_v22  ;;  %v499_v29 = vld [vmem:[%s1560_s1] sm:$0x3] }
 0x274   : > { %v505_v32 = vrot.slane %v499_v29, %v504_v30  ;;  %v509_v33 = vrot.slane %v499_v29, %v508_v31 }
 0x275   : > { %458 = vrot.lane.b32.xlu0 %v456_v23, %s1259_s17  ;;  %s1262_s17 = smov 96  }
 0x276   : > { %vm510_vm6 = vcmp.eq.s32.totalorder %v501_v28, %v505_v32  ;;  %vm511_vm7 = vcmp.eq.s32.totalorder %v501_v28, %v509_v33 }
 0x2e7   : > { %v459_v24 = vpop.permute.xlu0 %458 }
 0x2e8   : > { %461 = vst.msk [vmem:[#allocation2] sm:$0xf] %vm449_vm2, %v459_v24 }
 0x2ef   : > { %v466_v25 = vld [vmem:[#allocation2] sm:$0xf] }
 0x2f0   : > { %990 = vmatprep.mubr.msk.f32.mxu0 %vm267_vm4, %v466_v25  ;;  %v819_v15 = vld [vmem:[#allocation2] sm:$0xf] (%p814_p5) }
 0x2f1   : > { %991 = vmatmul.mubr.msk.f32.vlgmr.msra.gmra.mrb[0].mxu0 %vm267_vm4, %v466_v25  ;;  %820 = vst.msk [vmem:[#allocation8] sm:$0xf] (%p814_p5), %vm449_vm2, %v819_v15 }
 0x3c4   : > { %v678_v34 = vpop.f32.mrb[0].mxu0 }
 0x3c5   : > { %v683_v36 = vsel %vm510_vm6, %v678_v34, -1e+30  ;;  %v680_v37 = vpop.f32.mrb[1].mxu0 }
 0x3c6   : > { %v684_v38 = vsel %vm511_vm7, %v680_v37, -1e+30  ;;  %v686_v39 = vsel %vm685_vm8, %v683_v36, -inf }
 0x3c7   : > { %v687_v40 = vsel %vm685_vm8, %v684_v38, -inf }
 0x3c8   : > { %v688_v41 = vmax.f32 %v686_v39, %v687_v40 }
 0x3ca   : > { %689 = vmax.xlane.f32.xlu1 %v688_v41 }
 0x457   : > { %v690_v44 = vpop.xlane.xlu1 %689 }
 0x458   : > { %v692_v45 = vmax.f32 %v691_v43, %v690_v44 }
 0x45a   : > { %v693_v46 = vsub.f32 %v691_v43, %v692_v45  ;;  %799 = vst.msk [vmem:[#allocation5] sm:$0xf] %vm462_vm3, %v692_v45  ;;  %698 = vperm.xlu0 %1182, %v692_v45  }
 0x45c   : > { %v694_v47 = vmul.f32 1.442695, %v693_v46 }
 0x45e   : > { %1192 = vpow2.f32 %v694_v47 }
 0x468   : > { %v1193_v48 = vpop.eup %1192 }
 0x469   : > { %722 = vperm.xlu1 %1183, %v1193_v48   ;;  %v710_v63 = vmul.f32 %v1193_v48, %v709_v62 }
 0x46d   : > { %446 = vrot.lane.b32.xlu1 %v1357_v35, %s1262_s17 }
 0x4d9   : > { %v699_v49 = vpop.permute.xlu0 %698 }
 0x4da   : > { %v701_v50 = vsub.f32 %v678_v34, %v699_v49  ;;  %v702_v51 = vsub.f32 %v680_v37, %v699_v49 }
 0x4dc   : > { %v703_v52 = vsel %vm510_vm6, %v701_v50, -1e+30  ;;  %v704_v53 = vsel %vm511_vm7, %v702_v51, -1e+30 }
 0x4dd   : > { %v705_v54 = vmul.f32 1.442695, %v703_v52  ;;  %v707_v55 = vmul.f32 1.442695, %v704_v53 }
 0x4df   : > { %1194 = vpow2.f32 %v705_v54 }
 0x4e0   : > { %1196 = vpow2.f32 %v707_v55 }
 0x4e8   : > { %v723_v56 = vpop.permute.xlu1 %722 }
 0x4e9   : > { %v1195_v57 = vpop.eup %1194  ;;  %v725_v7 = vmul.f32 %v723_v56, %v719_v4 }
 0x4ea   : > { %v1197_v58 = vpop.eup %1196  ;;  %v711_v59 = vsel %vm685_vm8, %v1195_v57, 0.0 }
 0x4eb   : > { %790 = vmatprep.mubr.f32.mxu1 %v1197_v58  ;;  %v712_v35 = vsel %vm685_vm8, %v1197_v58, 0.0 }
 0x4ec   : > { %791 = vmatmul.mubr.f32.vlgmr.msra.gmra.mrb[4].mxu1 %v1195_v57  ;;  %v447_v60 = vpop.permute.xlu1 %446  ;;  %v713_v61 = vadd.f32 %v712_v35, %v711_v59 }
 0x4ed   : > { %450 = vst.msk [vmem:[#allocation3] sm:$0xf] %vm449_vm2, %v447_v60 }
 0x4ee   : > { %714 = vadd.xlane.f32.xlu0 %v713_v61 }
 0x57b   : > { %v715_v0 = vpop.xlane.xlu0 %714 }
 0x57c   : > { %v716_v1 = vadd.f32 %v715_v0, %v710_v63 }
 0x57e   : > { %718 = vst.msk [vmem:[#allocation6] sm:$0xf] %vm462_vm3, %v716_v1 }
 0x585   : > { %v804_v2 = vld [vmem:[#allocation6] sm:$0xf] }
 0x586   : > { %v805_v3 = vadd.f32 1e-16, %v804_v2 }
 0x588   : > { %808 = vperm.xlu0 %1182, %v805_v3  }
 0x5bf   : > { %v1024_v5 = vpop.f32.mrb[4].mxu1 }
 0x5c0   : > { %v1025_v6 = vpop.f32.mrb[5].mxu1 }
 0x5c1   : > { %v1026_v8 = vadd.f32 %v1025_v6, %v1024_v5 }
 0x5c3   : > { %v796_v9 = vadd.f32 %v1026_v8, %v725_v7 }
 0x5c5   : > { %798 = vst.msk [vmem:[#allocation7] sm:$0xf] %vm449_vm2, %v796_v9 }
 0x5cc   : > { %v803_v12 = vld [vmem:[#allocation7] sm:$0xf] }
 0x607   : > { %v809_v10 = vpop.permute.xlu0 %808 }
 0x608   : > { %1198 = vrcp.f32 %v809_v10 }
 0x60f   : > { %818 = sbr.rel (!%p814_p5) target bundleno = 1681 (0x691), region = 56 }
 0x612   : > { %v1199_v11 = vpop.eup %1198 }
 0x613   : > { %v812_v13 = vmul.f32 %v1199_v11, %v803_v12 }
 0x615   : > { %813 = vst.msk [vmem:[#allocation4] sm:$0xf] %vm449_vm2, %v812_v13 }
 0x61c   : > { %v821_v14 = vld [vmem:[#allocation4] sm:$0xf] }
 0x61d   : > { %823 = vrot.lane.b32.xlu0 %v821_v14, %s1263_s8 }
 0x68f   : > { %v824_v16 = vpop.permute.xlu0 %823 }
 0x690   : > { %827 = vst.msk [vmem:[#allocation8] sm:$0xf] %vm826_vm9, %v824_v16 }
 0x691 PF: > { %p1524_p6 = scmp.eq.s32.totalorder %s898_s21, 2  ;;  %s1264_s10 = smov [#allocation8]  }
 0x692   : > { %s835_s18 = sshll.u32 %s1264_s10, 4  ;;  %s836_s18 = int_to_ptr.vmem [resolvable:$true] %s835_s18 }
 0x693   : > { %s1200_s11 = scalar_lea.vmem %s836_s18, 64  ;;  %p1207_p10 = scmp.lt.s32.totalorder %s836_s18, %s836_s18 }
 0x694   : > { %p1201_p7 = scmp.ne.s32.totalorder %s836_s18, %s1200_s11  ;;  %p1208_p11 = scmp.lt.s32.totalorder %s1200_s11, %s1200_s11 }
 0x696   : > { %p1202_p8 = pnand %p1201_p7, %p1524_p6  ;;  %p1209_p12 = por %p1208_p11, %p1207_p10 }
 0x698   : > { %p1203_p9 = pneg %p1202_p8 }
 0x69a   : > { %p1210_p13 = pnand %p1209_p12, %p1203_p9 }
 0x69c   : > { %1213 = shalt.err (!%p1210_p13)
}
 0x69d   : > { %s1214_s21 = scalar_lea.hbm %s1564_s5, 64 }
 0x69e   : > { %p1215_p0 = scmp.ne.s32.totalorder %s1564_s5, %s1214_s21  ;;  %p1220_p3 = scmp.lt.u32.totalorder %s1214_s21, %s1564_s5 }
 0x6a0   : > { %p1216_p1 = pnand %p1215_p0, %p1524_p6 }
 0x6a2   : > { %p1217_p2 = pneg %p1216_p1 }
 0x6a4   : > { %p1222_p4 = pnand %p1220_p3, %p1217_p2 }
 0x6a6   : > { %1225 = shalt.err (!%p1222_p4)
}
 0x6a7   : > { %1142 = dma.vmem_to_hbm [thread:$0]  (%p1524_p6), %s836_s18, 64, %s1564_s5, [#allocation9]  }
 0x6a8   : > { %1239 = dma.done.wait (%p1524_p6), [#allocation9], 64  }
 0x6a9   : > { %1241 = vsyncadd (%p1524_p6), [#allocation9], 4294967232 }
 0x6aa PF: > { %s16_s20 = sadd.s32 1, %s1252_s20   ;;  %s1568_s18 = smov %s1248_s19 }
 0x6ab   : > { %p13_p5 = scmp.ge.s32.totalorder %s16_s20, 5   ;;  %s1569_s19 = smov %s1571_s22 }
 0x6ad   :  { %15 = sbr.rel (!%p13_p5) target bundleno = 2 (0x2), region = 86 }
 0x6b4   :  { %848 = vsyncpa [#allocation9], 1 }
 0x6b5   :  { %850 = vsyncpa [#allocation9 + $0x1], 1 }

</bundles_post_ra>
